<compile_context>
chip_gen: v7x
topology: tpu7x:2x2x1
jax: 0.10.0
libtpu: 0.0.40
codegen_flags: <defaults>
</compile_context>

<pallas_src>
import functools

import jax
import jax.numpy as jnp
from jax.experimental import pallas as pl
from jax.experimental.pallas import tpu as pltpu

_H = 128          # padded lane width for hidden layers (50/40/30/20) and head
_N_LAYERS = 5


def _round_up(x, m):
    return ((x + m - 1) // m) * m


def _has_bf16_vpu():
    """v6e/v7x have a bf16 VALU; v5e and older don't -> keep ReLU math in f32."""
    try:
        kind = jax.devices()[0].device_kind.lower()
    except Exception:
        return True
    return not any(tag in kind for tag in ("v2", "v3", "v4", "v5"))


def _choose_tile(B, tile_b):
    """Batch tile: multiple of 32; >= 2 grid steps when the batch allows."""
    b32 = _round_up(max(B, 1), 32)
    tile = max(32, min(_round_up(tile_b, 32), b32))
    if tile >= b32 and b32 >= 64:
        tile = _round_up(b32 // 2, 32)     # keep both v7x TensorCores busy
    return tile


def _dnn_kernel(x_ref, w_in_ref, w_hid_ref, b_ref, o_ref, *, bf16_relu):
    """One batch tile through the 5-layer MLP, all widths padded to 128 lanes.

    x_ref:     (TILE_B, D_pad)  f32   input tile (cast to bf16 in-kernel)
    w_in_ref:  (D_pad, H)       bf16  layer-1 weight (zero padded)
    w_hid_ref: (4, H, H)        bf16  layers 2..5 weights (zero padded)
    b_ref:     (5, H)           f32   biases (zero padded)
    o_ref:     (TILE_B, H)      bf16  lane-dense padded output
    """
    # Layer 1: cast right before the MXU; bias adds via implicit (1,H)
    # sublane broadcast (no materialized broadcast_to).
    h = x_ref[...].astype(jnp.bfloat16)
    a = jnp.dot(h, w_in_ref[...], preferred_element_type=jnp.float32) + b_ref[0:1, :]

    n_hidden = w_hid_ref.shape[0]          # 4 (layers 2..5)
    for l in range(n_hidden):
        if bf16_relu:
            h = jnp.maximum(a.astype(jnp.bfloat16), 0)      # bf16 VALU path
        else:
            h = jnp.maximum(a, 0.0).astype(jnp.bfloat16)    # f32 VALU path (v5e)
        a = (jnp.dot(h, w_hid_ref[l], preferred_element_type=jnp.float32)
             + b_ref[l + 1:l + 2, :])

    o_ref[...] = a.astype(o_ref.dtype)     # last layer: no activation


def pack_dnn_params(params):
    """Pack the 10 tiny weight/bias tensors into 3 HBM slabs. Do this ONCE and
    reuse across forward calls (zero-padding is exact through dot/ReLU)."""
    assert len(params) == _N_LAYERS
    d_in = params[0][0].shape[0]
    n_classes = params[-1][0].shape[1]
    assert n_classes <= _H, "n_classes must be <= 128 for this packing"
    d_pad = _round_up(d_in, 128)

    w1, b1 = params[0]
    w_in = jnp.zeros((d_pad, _H), jnp.bfloat16)
    w_in = w_in.at[:w1.shape[0], :w1.shape[1]].set(w1.astype(jnp.bfloat16))

    w_hid = jnp.zeros((_N_LAYERS - 1, _H, _H), jnp.bfloat16)
    b_all = jnp.zeros((_N_LAYERS, _H), jnp.float32)
    b_all = b_all.at[0, :b1.shape[1]].set(b1[0].astype(jnp.float32))
    for l in range(1, _N_LAYERS):
        w, b = params[l]
        w_hid = w_hid.at[l - 1, :w.shape[0], :w.shape[1]].set(
            w.astype(jnp.bfloat16))
        b_all = b_all.at[l, :b.shape[1]].set(b[0].astype(jnp.float32))
    return w_in, w_hid, b_all, n_classes


@functools.partial(
    jax.jit,
    static_argnames=("n_classes", "tile_b", "out_dtype", "bf16_relu"))
def dnn_forward_packed(x, w_in, w_hid, b_all, *, n_classes, tile_b=1024,
                       out_dtype=jnp.float32, bf16_relu=True):
    """Jitted forward on pre-packed parameter slabs."""
    B, D = x.shape
    D_pad = w_in.shape[0]
    assert D <= D_pad

    tile = _choose_tile(B, tile_b)
    B_pad = _round_up(B, tile)

    # Pad only when shapes require it; otherwise x goes straight to the kernel.
    x_in = x.astype(jnp.float32)
    if (B_pad, D_pad) != (B, D):
        x_in = jnp.pad(x_in, ((0, B_pad - B), (0, D_pad - D)))

    # Conservative VMEM budget: double-buffered x/out blocks + (double-buffered)
    # resident weight slabs, with headroom. Never below the 32 MiB default.
    need = 2 * (tile * D_pad * 4 + tile * _H * 2
                + D_pad * _H * 2 + w_hid.shape[0] * _H * _H * 2 + b_all.size * 4)
    vmem_limit = int(min(max(32 << 20, 2 * need), 96 << 20))
    # TODO(synk): for very large D on v7x (64 MiB VMEM), single-buffer the
    # constant-index weight slabs (pipeline_mode=pl.Buffered(1)).

    kernel = functools.partial(_dnn_kernel, bf16_relu=bf16_relu)
    out_padded = pl.pallas_call(
        kernel,
        out_shape=jax.ShapeDtypeStruct((B_pad, _H), jnp.bfloat16),
        grid_spec=pltpu.PrefetchScalarGridSpec(
            num_scalar_prefetch=0,
            grid=(B_pad // tile,),
            in_specs=[
                # x: tiled along batch, double-buffered by the pipeline.
                pl.BlockSpec((tile, D_pad), lambda i: (i, 0)),
                # weights / biases: constant index_map -> VMEM-resident.
                pl.BlockSpec((D_pad, _H), lambda i: (0, 0)),
                pl.BlockSpec((w_hid.shape[0], _H, _H), lambda i: (0, 0, 0)),
                pl.BlockSpec((b_all.shape[0], _H), lambda i: (0, 0)),
            ],
            out_specs=pl.BlockSpec((tile, _H), lambda i: (i, 0)),
        ),
        compiler_params=pltpu.CompilerParams(
            dimension_semantics=("parallel",),
            vmem_limit_bytes=vmem_limit),
    )(x_in, w_in, w_hid, b_all)

    # Slice + cast fuse under jit (no extra eager pass over the padded slab).
    return out_padded[:B, :n_classes].astype(out_dtype)


def dnn_forward(x, params, *, tile_b=1024, out_dtype=jnp.float32):
    """Convenience wrapper: packs params (ideally hoist pack_dnn_params out of
    hot loops and call dnn_forward_packed directly) and runs the kernel."""
    w_in, w_hid, b_all, n_classes = pack_dnn_params(params)
    return dnn_forward_packed(x, w_in, w_hid, b_all, n_classes=n_classes,
                              tile_b=tile_b, out_dtype=out_dtype,
                              bf16_relu=_has_bf16_vpu())


def init_dnn_params(key, input_dim, n_classes):
    """Mirror init_weights(): weight ~ (U(0,1)-0.5)*0.2, bias ~ (U(0,1)-0.5)*0.1.
    Weights stored as (in, out) — already transposed vs torch."""
    dims = [input_dim, 50, 40, 30, 20, n_classes]
    params = []
    for i in range(5):
        key, kw, kb = jax.random.split(key, 3)
        w = (jax.random.uniform(kw, (dims[i], dims[i + 1]), jnp.float32) - 0.5) * 0.2
        b = (jax.random.uniform(kb, (1, dims[i + 1]), jnp.float32) - 0.5) * 0.1
        params.append((w, b))
    return params


def dnn_forward_ref_f32(x, params):
    """Plain-JAX f32 reference (exact module semantics)."""
    h = x
    for i, (w, b) in enumerate(params):
        h = h @ w + b
        if i < len(params) - 1:
            h = jnp.maximum(h, 0.0)
    return h


def dnn_forward_ref_bf16(x, params):
    """Plain-JAX reference matching the kernel precision (bf16 MXU inputs,
    f32 accumulation/bias, bf16 activations and bf16 output store)."""
    h = x.astype(jnp.bfloat16)
    for i, (w, b) in enumerate(params):
        a = jnp.dot(h, w.astype(jnp.bfloat16),
                    preferred_element_type=jnp.float32) + b
        if i < len(params) - 1:
            h = jnp.maximum(a, 0.0).astype(jnp.bfloat16)
        else:
            h = a
    return h.astype(jnp.bfloat16).astype(jnp.float32)


if __name__ == "__main__":
    key = jax.random.PRNGKey(0)

    configs = [
        dict(B=40,  D=16, C=1, tile_b=16),    # small tile -> 2 grid steps + tail pad
        dict(B=8,   D=16, C=3, tile_b=1024),  # single 32-row tile
        dict(B=200, D=33, C=4, tile_b=1024),  # default tile path, D not /128
    ]

    for cfg in configs:
        key, kx, kp = jax.random.split(key, 3)
        x = jax.random.normal(kx, (cfg["B"], cfg["D"]), dtype=jnp.float32)
        params = init_dnn_params(kp, cfg["D"], cfg["C"])

        out = jax.block_until_ready(dnn_forward(x, params, tile_b=cfg["tile_b"]))
        assert out.shape == (cfg["B"], cfg["C"])
        assert out.dtype == jnp.float32

        ref_bf = dnn_forward_ref_bf16(x, params)
        ref_32 = dnn_forward_ref_f32(x, params)
        # Tight check vs. matched-precision reference (catches layout bugs).
        assert jnp.allclose(out, ref_bf, atol=1e-3, rtol=1e-3), \
            "mismatch vs matched-precision reference"
        # Looser check vs. pure-f32 module semantics (bf16 MXU inputs/output).
        assert jnp.allclose(out, ref_32, atol=2e-2, rtol=2e-2), \
            "mismatch vs f32 reference"

    print("KERNEL_OK")
</pallas_src>

<mosaic_0001>
module attributes {stable_mosaic.version = 11 : i64} {
  func.func @_dnn_kernel(%arg0: i32, %arg1: memref<32x128xf32, #tpu.memory_space<vmem>>, %arg2: memref<128x128xbf16, #tpu.memory_space<vmem>>, %arg3: memref<4x128x128xbf16, #tpu.memory_space<vmem>>, %arg4: memref<5x128xf32, #tpu.memory_space<vmem>>, %arg5: memref<32x128xbf16, #tpu.memory_space<vmem>>) attributes {dimension_semantics = [#tpu.dimension_semantics<parallel>], iteration_bounds = array<i64: 2>, scalar_prefetch = 0 : i64, scratch_operands = 0 : i64, tpu.core_type = #tpu.core_type<tc>, window_params = [{transform_indices = @transform_0, window_bounds = array<i64: 32, 128>}, {pipeline_mode = #tpu.pipeline_mode<synchronous>, transform_indices = @transform_1, window_bounds = array<i64: 128, 128>}, {pipeline_mode = #tpu.pipeline_mode<synchronous>, transform_indices = @transform_2, window_bounds = array<i64: 4, 128, 128>}, {pipeline_mode = #tpu.pipeline_mode<synchronous>, transform_indices = @transform_3, window_bounds = array<i64: 5, 128>}, {transform_indices = @transform_4, window_bounds = array<i64: 32, 128>}]} {
    %c0 = arith.constant 0 : index
    %c0_0 = arith.constant 0 : index
    %0 = vector.load %arg1[%c0, %c0_0] : memref<32x128xf32, #tpu.memory_space<vmem>>, vector<32x128xf32>
    %1 = arith.truncf %0 : vector<32x128xf32> to vector<32x128xbf16>
    %c0_1 = arith.constant 0 : index
    %c0_2 = arith.constant 0 : index
    %2 = vector.load %arg2[%c0_1, %c0_2] : memref<128x128xbf16, #tpu.memory_space<vmem>>, vector<128x128xbf16>
    %cst = arith.constant dense<0.000000e+00> : vector<32x128xf32>
    %3 = tpu.matmul %1, %2, %cst {dimension_numbers = #tpu.dot_dimension_numbers<[1], [0], [0], [1], [0, 0, 1, 1], [], []>} : vector<32x128xbf16>, vector<128x128xbf16>, vector<32x128xf32> -> vector<32x128xf32>
    %c0_3 = arith.constant 0 : index
    %c0_4 = arith.constant 0 : index
    %4 = vector.load %arg4[%c0_3, %c0_4] : memref<5x128xf32, #tpu.memory_space<vmem>>, vector<1x128xf32>
    %5 = vector.broadcast %4 : vector<1x128xf32> to vector<32x128xf32>
    %6 = arith.addf %3, %5 : vector<32x128xf32>
    %7 = arith.truncf %6 : vector<32x128xf32> to vector<32x128xbf16>
    %cst_5 = arith.constant 0.000000e+00 : bf16
    %8 = vector.broadcast %cst_5 : bf16 to vector<32x128xbf16>
    %9 = arith.maximumf %7, %8 : vector<32x128xbf16>
    %c0_6 = arith.constant 0 : index
    %c0_7 = arith.constant 0 : index
    %c0_8 = arith.constant 0 : index
    %10 = vector.load %arg3[%c0_6, %c0_7, %c0_8] : memref<4x128x128xbf16, #tpu.memory_space<vmem>>, vector<1x128x128xbf16>
    %11 = vector.shape_cast %10 : vector<1x128x128xbf16> to vector<128x128xbf16>
    %cst_9 = arith.constant dense<0.000000e+00> : vector<32x128xf32>
    %12 = tpu.matmul %9, %11, %cst_9 {dimension_numbers = #tpu.dot_dimension_numbers<[1], [0], [0], [1], [0, 0, 1, 1], [], []>} : vector<32x128xbf16>, vector<128x128xbf16>, vector<32x128xf32> -> vector<32x128xf32>
    %c1 = arith.constant 1 : index
    %c0_10 = arith.constant 0 : index
    %13 = vector.load %arg4[%c1, %c0_10] : memref<5x128xf32, #tpu.memory_space<vmem>>, vector<1x128xf32>
    %14 = vector.broadcast %13 : vector<1x128xf32> to vector<32x128xf32>
    %15 = arith.addf %12, %14 : vector<32x128xf32>
    %16 = arith.truncf %15 : vector<32x128xf32> to vector<32x128xbf16>
    %cst_11 = arith.constant 0.000000e+00 : bf16
    %17 = vector.broadcast %cst_11 : bf16 to vector<32x128xbf16>
    %18 = arith.maximumf %16, %17 : vector<32x128xbf16>
    %c1_12 = arith.constant 1 : index
    %c0_13 = arith.constant 0 : index
    %c0_14 = arith.constant 0 : index
    %19 = vector.load %arg3[%c1_12, %c0_13, %c0_14] : memref<4x128x128xbf16, #tpu.memory_space<vmem>>, vector<1x128x128xbf16>
    %20 = vector.shape_cast %19 : vector<1x128x128xbf16> to vector<128x128xbf16>
    %cst_15 = arith.constant dense<0.000000e+00> : vector<32x128xf32>
    %21 = tpu.matmul %18, %20, %cst_15 {dimension_numbers = #tpu.dot_dimension_numbers<[1], [0], [0], [1], [0, 0, 1, 1], [], []>} : vector<32x128xbf16>, vector<128x128xbf16>, vector<32x128xf32> -> vector<32x128xf32>
    %c2 = arith.constant 2 : index
    %c0_16 = arith.constant 0 : index
    %22 = vector.load %arg4[%c2, %c0_16] : memref<5x128xf32, #tpu.memory_space<vmem>>, vector<1x128xf32>
    %23 = vector.broadcast %22 : vector<1x128xf32> to vector<32x128xf32>
    %24 = arith.addf %21, %23 : vector<32x128xf32>
    %25 = arith.truncf %24 : vector<32x128xf32> to vector<32x128xbf16>
    %cst_17 = arith.constant 0.000000e+00 : bf16
    %26 = vector.broadcast %cst_17 : bf16 to vector<32x128xbf16>
    %27 = arith.maximumf %25, %26 : vector<32x128xbf16>
    %c2_18 = arith.constant 2 : index
    %c0_19 = arith.constant 0 : index
    %c0_20 = arith.constant 0 : index
    %28 = vector.load %arg3[%c2_18, %c0_19, %c0_20] : memref<4x128x128xbf16, #tpu.memory_space<vmem>>, vector<1x128x128xbf16>
    %29 = vector.shape_cast %28 : vector<1x128x128xbf16> to vector<128x128xbf16>
    %cst_21 = arith.constant dense<0.000000e+00> : vector<32x128xf32>
    %30 = tpu.matmul %27, %29, %cst_21 {dimension_numbers = #tpu.dot_dimension_numbers<[1], [0], [0], [1], [0, 0, 1, 1], [], []>} : vector<32x128xbf16>, vector<128x128xbf16>, vector<32x128xf32> -> vector<32x128xf32>
    %c3 = arith.constant 3 : index
    %c0_22 = arith.constant 0 : index
    %31 = vector.load %arg4[%c3, %c0_22] : memref<5x128xf32, #tpu.memory_space<vmem>>, vector<1x128xf32>
    %32 = vector.broadcast %31 : vector<1x128xf32> to vector<32x128xf32>
    %33 = arith.addf %30, %32 : vector<32x128xf32>
    %34 = arith.truncf %33 : vector<32x128xf32> to vector<32x128xbf16>
    %cst_23 = arith.constant 0.000000e+00 : bf16
    %35 = vector.broadcast %cst_23 : bf16 to vector<32x128xbf16>
    %36 = arith.maximumf %34, %35 : vector<32x128xbf16>
    %c3_24 = arith.constant 3 : index
    %c0_25 = arith.constant 0 : index
    %c0_26 = arith.constant 0 : index
    %37 = vector.load %arg3[%c3_24, %c0_25, %c0_26] : memref<4x128x128xbf16, #tpu.memory_space<vmem>>, vector<1x128x128xbf16>
    %38 = vector.shape_cast %37 : vector<1x128x128xbf16> to vector<128x128xbf16>
    %cst_27 = arith.constant dense<0.000000e+00> : vector<32x128xf32>
    %39 = tpu.matmul %36, %38, %cst_27 {dimension_numbers = #tpu.dot_dimension_numbers<[1], [0], [0], [1], [0, 0, 1, 1], [], []>} : vector<32x128xbf16>, vector<128x128xbf16>, vector<32x128xf32> -> vector<32x128xf32>
    %c4 = arith.constant 4 : index
    %c0_28 = arith.constant 0 : index
    %40 = vector.load %arg4[%c4, %c0_28] : memref<5x128xf32, #tpu.memory_space<vmem>>, vector<1x128xf32>
    %41 = vector.broadcast %40 : vector<1x128xf32> to vector<32x128xf32>
    %42 = arith.addf %39, %41 : vector<32x128xf32>
    %43 = arith.truncf %42 : vector<32x128xf32> to vector<32x128xbf16>
    %c0_29 = arith.constant 0 : index
    %c0_30 = arith.constant 0 : index
    %44 = vector.load %arg5[%c0_29, %c0_30] : memref<32x128xbf16, #tpu.memory_space<vmem>>, vector<32x128xbf16>
    tpu.vector_store %arg5[%c0_29, %c0_30], %43 {strides = array<i32>} : memref<32x128xbf16, #tpu.memory_space<vmem>>, vector<32x128xbf16>,
    return
  }
  func.func @transform_0(%arg0: i32) -> (i32, i32) {
    %c0_i32 = arith.constant 0 : i32
    %c0_i32_0 = arith.constant 0 : i32
    return %arg0, %c0_i32 : i32, i32
  }
  func.func @transform_1(%arg0: i32) -> (i32, i32) {
    %c0_i32 = arith.constant 0 : i32
    %c0_i32_0 = arith.constant 0 : i32
    %c0_i32_1 = arith.constant 0 : i32
    return %c0_i32, %c0_i32_0 : i32, i32
  }
  func.func @transform_2(%arg0: i32) -> (i32, i32, i32) {
    %c0_i32 = arith.constant 0 : i32
    %c0_i32_0 = arith.constant 0 : i32
    %c0_i32_1 = arith.constant 0 : i32
    %c0_i32_2 = arith.constant 0 : i32
    return %c0_i32, %c0_i32_0, %c0_i32_1 : i32, i32, i32
  }
  func.func @transform_3(%arg0: i32) -> (i32, i32) {
    %c0_i32 = arith.constant 0 : i32
    %c0_i32_0 = arith.constant 0 : i32
    %c0_i32_1 = arith.constant 0 : i32
    return %c0_i32, %c0_i32_0 : i32, i32
  }
  func.func @transform_4(%arg0: i32) -> (i32, i32) {
    %c0_i32 = arith.constant 0 : i32
    %c0_i32_0 = arith.constant 0 : i32
    return %arg0, %c0_i32 : i32, i32
  }
}

</mosaic_0001>

<bundles_post_ra>
// kernel: dnn_forward_packed.1
= control target key start
LH: loop header
LB: loop body
LE: loop exit
PB: predicated region body
PF: predicated region fallthrough
CT: control target
= control target key end

     0   :  { %9 = vsyncpa [#allocation3], 0  ;;  %s1278_s15 = smov 0   ;;  %s1394_s0 = inlined_call_operand.vmem [shape: f32[64,128], index: 0, kind: input, shape index: {}]   ;;  %s1395_s1 = inlined_call_operand.vmem [shape: bf16[128,128], index: 1, kind: input, shape index: {}]   ;;  %s1396_s2 = inlined_call_operand.hbm [shape: bf16[4,128,128], index: 2, kind: input, shape index: {}]   ;;  %s1397_s3 = inlined_call_operand.vmem [shape: f32[5,128], index: 3, kind: input, shape index: {}]   ;;  %s1398_s4 = inlined_call_operand.vmem [shape: bf16[64,128], index: 4, kind: output, shape index: {}]  }
   0x1 LB: > { %s920_s16 = sadd.s32 4294967295, %s1247_s15   ;;  %p922_p0 = scmp.ge.s32.totalorder %s1247_s15, 1  ;;  %s1247_s15 = sphi %s1278_s15, %s15_s15  }
   0x2   : > { %p135_p1 = scmp.lt.s32.totalorder %s1247_s15, 3  ;;  %s1249_s17 = smov [#allocation2]  }
   0x3   : > { %s150_s18 = sshll.u32 %s1249_s17, 4  ;;  %p1292_p3 = scmp.eq.s32.totalorder %s920_s16, 0  ;;  %s151_s18 = int_to_ptr.vmem [resolvable:$true] %s150_s18 }
   0x4   : > { %p1286_p2 = pnand %p922_p0, %p135_p1  ;;  %s1209_s24 = scalar_lea.hbm %s1396_s2, 4096 }
   0x5   : > { %s1403_s20 = scalar_select %p1292_p3, 1, 0 }
   0x6   : > { %s1402_s19 = scalar_select %p1286_p2, 1, 0 }
   0x7   : > { %p1151_p4 = pneg %p1286_p2  ;;  %p1210_p6 = scmp.ne.s32.totalorder %s1396_s2, %s1209_s24 }
   0x8   : > { %p1216_p10 = scmp.lt.u32.totalorder %s1209_s24, %s1396_s2 }
   0x9   : > { %p1300_p5 = pnand %p1292_p3, %p1151_p4 }
   0xb   : > { %p1211_p7 = pneg %p1300_p5 }
   0xd   : > { %p1212_p8 = pnand %p1211_p7, %p1210_p6 }
   0xf   : > { %p1213_p9 = pneg %p1212_p8 }
  0x11   : > { %p1218_p11 = pnand %p1216_p10, %p1213_p9 }
  0x13   : > { %1221 = shalt.err (!%p1218_p11)
}
  0x14   : > { %s1222_s29 = scalar_lea.vmem %s151_s18, 4096  ;;  %p1230_p1 = scmp.lt.s32.totalorder %s151_s18, %s151_s18 }
  0x15   : > { %p1223_p12 = scmp.ne.s32.totalorder %s151_s18, %s1222_s29  ;;  %p1231_p4 = scmp.lt.s32.totalorder %s1222_s29, %s1222_s29 }
  0x17   : > { %p1225_p13 = pnand %p1223_p12, %p1211_p7  ;;  %p1232_p3 = por %p1231_p4, %p1230_p1 }
  0x19   : > { %p1226_p0 = pneg %p1225_p13 }
  0x1b   : > { %p1233_p2 = pnand %p1232_p3, %p1226_p0 }
  0x1d   : > { %1236 = shalt.err (!%p1233_p2)
}
  0x1e   : > { %s1250_s30 = smov 64   ;;  %s1251_s5 = smov 4  }
  0x1f   : > { %1154 = dma.hbm_to_vmem [thread:$0]  (!%p1300_p5), %s1396_s2, 4096, %s151_s18, [#allocation3], %s1250_s30, %s1250_s30, %s1251_s5  }
  0x20   : > { %p1405_p6 = scmp.ne.s32.totalorder %s1402_s19, 0 }
  0x21   : > { %p1406_p8 = scmp.ne.s32.totalorder (!%p1405_p6), %s1403_s20, 0 }
  0x22   : > { %178 = sbr.rel (%p1405_p6) target bundleno = 1183 (0x49f), region = 36 }
  0x29   : > { %1242 = dma.done.wait (%p1406_p8), [#allocation3], 4096  }
  0x2a   : > { %1244 = vsyncadd (%p1406_p8), [#allocation3], 4294963200  ;;  %s927_s8 = sshll.u32 %s920_s16, 2  ;;  %v1169_v0 = vld [vmem:[%s1395_s1] sm:$0xff]   ;;  %v1170_v1 = vld [vmem:[%s1395_s1 + $0x8] sm:$0xff]   ;;  %v1252_v39 = vmov 0  }
  0x2b   : > { %p205_p2 = scmp.lt.s32.totalorder %s927_s8, 7  ;;  %1047 = vmatprep.subr.bf16.mxu0 %v1169_v0  ;;  %v1171_v2 = vld [vmem:[%s1395_s1 + $0x10] sm:$0xff]   ;;  %v1172_v3 = vld [vmem:[%s1395_s1 + $0x18] sm:$0xff]   ;;  %v1177_v7 = vld [vmem:[#allocation2] sm:$0xff]  }
  0x2c   : > { %1048 = vmatpush3.bf16.msra.mxu0 %v1169_v0  ;;  %v1178_v8 = vld [vmem:[#allocation2 + $0x8] sm:$0xff]   ;;  %v1173_v9 = vld [vmem:[%s1395_s1 + $0x20] sm:$0xff]   ;;  %1067 = vmatprep.subr.bf16.mxu1 %v1177_v7  ;;  %v1179_v10 = vld [vmem:[#allocation2 + $0x10] sm:$0xff]  }
  0x2d   : > { %s1408_s8 = smov (!%p205_p2, %s927_s8), 7  ;;  %1049 = vmatprep.subr.bf16.mxu0 %v1170_v1  ;;  %1068 = vmatpush3.bf16.msra.mxu1 %v1177_v7  ;;  %v1174_v11 = vld [vmem:[%s1395_s1 + $0x28] sm:$0xff]   ;;  %v1180_v12 = vld [vmem:[#allocation2 + $0x18] sm:$0xff]   ;;  %v1175_v13 = vld [vmem:[%s1395_s1 + $0x30] sm:$0xff]  }
  0x2e   : > { %s928_s13 = sshll.u32 %s1408_s8, 3  ;;  %1069 = vmatprep.subr.bf16.mxu1 %v1178_v8  ;;  %v1181_v14 = vld [vmem:[#allocation2 + $0x20] sm:$0xff]   ;;  %v1176_v15 = vld [vmem:[%s1395_s1 + $0x38] sm:$0xff]   ;;  %v1182_v16 = vld [vmem:[#allocation2 + $0x28] sm:$0xff]   ;;  %s930_s17 = sshll.u32 %s1408_s8, 2 }
  0x2f   : > { %s1343_s19 = scalar_lea.vmem %s1394_s0, %s928_s13  ;;  %v1183_v20 = vld [vmem:[#allocation2 + $0x30] sm:$0xff]   ;;  %v1184_v21 = vld [vmem:[#allocation2 + $0x38] sm:$0xff]   ;;  %v1185_v22 = vld [vmem:[#allocation2 + $0x40] sm:$0xff]  }
  0x30   : > { %1050 = vmatpush3.bf16.msra.mxu0 %v1170_v1  ;;  %v217_v4 = vld [vmem:[%s1343_s19] sm:$0xff]  ;;  %v218_v5 = vld [vmem:[%s1343_s19 + $0x8] sm:$0xff]  ;;  %v219_v17 = vld [vmem:[%s1343_s19 + $0x10] sm:$0xff] }
  0x31   : > { %1051 = vmatprep.subr.bf16.mxu0 %v1171_v2  ;;  %v221_v6 = vpack.c.bf16 %v218_v5, %v217_v4  ;;  %1070 = vmatpush3.bf16.msra.mxu1 %v1178_v8  ;;  %v220_v18 = vld [vmem:[%s1343_s19 + $0x18] sm:$0xff]  ;;  %v1186_v23 = vld [vmem:[#allocation2 + $0x48] sm:$0xff]   ;;  %v1187_v24 = vld [vmem:[#allocation2 + $0x50] sm:$0xff]   ;;  %s214_s19 = scalar_lea.vmem %s1398_s4, %s930_s17 }
  0x32   : > { %1071 = vmatprep.subr.bf16.mxu1 %v1179_v10  ;;  %v222_v19 = vpack.c.bf16 %v220_v18, %v219_v17  ;;  %v1188_v25 = vld [vmem:[#allocation2 + $0x58] sm:$0xff]   ;;  %v1189_v26 = vld [vmem:[#allocation2 + $0x60] sm:$0xff]   ;;  %v1190_v27 = vld [vmem:[#allocation2 + $0x68] sm:$0xff]  }
  0x33   : > { %1063 = vmatprep.mubr.bf16.mxu0 %v221_v6  ;;  %v931_v29 = vld [vmem:[%s1397_s3] ss:$0 sm:$0xff]  ;;  %v1191_v42 = vld [vmem:[#allocation2 + $0x70] sm:$0xff]   ;;  %v1192_v43 = vld [vmem:[#allocation2 + $0x78] sm:$0xff]  }
  0x34   : > { %1052 = vmatpush3.bf16.msra.mxu0 %v1171_v2  ;;  %v1193_v44 = vld [vmem:[#allocation2 + $0x80] sm:$0xff]   ;;  %v1194_v45 = vld [vmem:[#allocation2 + $0x88] sm:$0xff]   ;;  %v1195_v46 = vld [vmem:[#allocation2 + $0x90] sm:$0xff]  }
  0x35   : > { %1053 = vmatprep.subr.bf16.mxu0 %v1172_v3  ;;  %1072 = vmatpush3.bf16.msra.mxu1 %v1179_v10  ;;  %v1196_v47 = vld [vmem:[#allocation2 + $0x98] sm:$0xff]   ;;  %v1197_v48 = vld [vmem:[#allocation2 + $0xa0] sm:$0xff]   ;;  %v1198_v49 = vld [vmem:[#allocation2 + $0xa8] sm:$0xff]  }
  0x36   : > { %1073 = vmatprep.subr.bf16.mxu1 %v1180_v12  ;;  %v940_v51 = vld [vmem:[%s1397_s3 + $0x1] ss:$0 sm:$0xff]  ;;  %v1199_v63 = vld [vmem:[#allocation2 + $0xb0] sm:$0xff]   ;;  %v1200_v0 = vld [vmem:[#allocation2 + $0xb8] sm:$0xff]  }
  0x37   : > { %v1201_v1 = vld [vmem:[#allocation2 + $0xc0] sm:$0xff]   ;;  %v1202_v2 = vld [vmem:[#allocation2 + $0xc8] sm:$0xff]   ;;  %v1204_v4 = vld [vmem:[#allocation2 + $0xd8] sm:$0xff]  }
  0x38   : > { %1054 = vmatpush3.bf16.msra.mxu0 %v1172_v3  ;;  %v1203_v3 = vld [vmem:[#allocation2 + $0xd0] sm:$0xff]   ;;  %v1205_v5 = vld [vmem:[#allocation2 + $0xe0] sm:$0xff]   ;;  %v1206_v6 = vld [vmem:[#allocation2 + $0xe8] sm:$0xff]  }
  0x39   : > { %1055 = vmatprep.subr.bf16.mxu0 %v1173_v9  ;;  %1074 = vmatpush3.bf16.msra.mxu1 %v1180_v12  ;;  %v949_v8 = vld [vmem:[%s1397_s3 + $0x2] ss:$0 sm:$0xff] }
  0x3a   : > { %1075 = vmatprep.subr.bf16.mxu1 %v1181_v14 }
  0x3c   : > { %1056 = vmatpush3.bf16.msra.mxu0 %v1173_v9 }
  0x3d   : > { %1057 = vmatprep.subr.bf16.mxu0 %v1174_v11  ;;  %1076 = vmatpush3.bf16.msra.mxu1 %v1181_v14 }
  0x3e   : > { %1077 = vmatprep.subr.bf16.mxu1 %v1182_v16 }
  0x40   : > { %1058 = vmatpush3.bf16.msra.mxu0 %v1174_v11 }
  0x41   : > { %1059 = vmatprep.subr.bf16.mxu0 %v1175_v13  ;;  %1078 = vmatpush3.bf16.msra.mxu1 %v1182_v16 }
  0x42   : > { %1079 = vmatprep.subr.bf16.mxu1 %v1183_v20 }
  0x44   : > { %1060 = vmatpush3.bf16.msra.mxu0 %v1175_v13 }
  0x45   : > { %1061 = vmatprep.subr.bf16.mxu0 %v1176_v15  ;;  %1080 = vmatpush3.bf16.msra.mxu1 %v1183_v20  ;;  %v1207_v20 = vld [vmem:[#allocation2 + $0xf0] sm:$0xff]  }
  0x46   : > { %1081 = vmatprep.subr.bf16.mxu1 %v1184_v21 }
  0x48   : > { %1062 = vmatpush3.bf16.msra.mxu0 %v1176_v15 }
  0x49   : > { %1082 = vmatpush3.bf16.msra.mxu1 %v1184_v21  ;;  %1087 = vmatprep.subr.bf16.mxu0 %v1185_v22  ;;  %v1208_v21 = vld [vmem:[#allocation2 + $0xf8] sm:$0xff]  }
  0x4a   : > { %1107 = vmatprep.subr.bf16.mxu1 %v1193_v44 }
  0x4b   : > { %1064 = vmatmul.mubr.bf16.vlgmr.msra.gmra.mrb[0].mxu0 %v222_v19 }
  0x4c   : > { %1088 = vmatpush3.bf16.msra.mxu0 %v1185_v22 }
  0x4d   : > { %1089 = vmatprep.subr.bf16.mxu0 %v1186_v23 }
  0x50   : > { %1090 = vmatpush3.bf16.msra.mxu0 %v1186_v23  ;;  %v958_v23 = vld [vmem:[%s1397_s3 + $0x3] ss:$0 sm:$0xff] }
  0x51   : > { %1091 = vmatprep.subr.bf16.mxu0 %v1187_v24 }
  0x54   : > { %1092 = vmatpush3.bf16.msra.mxu0 %v1187_v24 }
  0x55   : > { %1093 = vmatprep.subr.bf16.mxu0 %v1188_v25 }
  0x58   : > { %1094 = vmatpush3.bf16.msra.mxu0 %v1188_v25 }
  0x59   : > { %1095 = vmatprep.subr.bf16.mxu0 %v1189_v26 }
  0x5c   : > { %1096 = vmatpush3.bf16.msra.mxu0 %v1189_v26 }
  0x5d   : > { %1097 = vmatprep.subr.bf16.mxu0 %v1190_v27 }
  0x60   : > { %1098 = vmatpush3.bf16.msra.mxu0 %v1190_v27 }
  0x61   : > { %1099 = vmatprep.subr.bf16.mxu0 %v1191_v42 }
  0x64   : > { %1100 = vmatpush3.bf16.msra.mxu0 %v1191_v42 }
  0x65   : > { %1101 = vmatprep.subr.bf16.mxu0 %v1192_v43 }
  0x68   : > { %1102 = vmatpush3.bf16.msra.mxu0 %v1192_v43 }
  0x69   : > { %1127 = vmatprep.subr.bf16.mxu0 %v1201_v1 }
 0x11e   : > { %v1065_v28 = vpop.f32.mrb[0].mxu0 }
 0x11f   : > { %v326_v30 = vpop.f32.mrb[1].mxu0  ;;  %v335_v32 = vadd.f32 %v1065_v28, %v931_v29 }
 0x120   : > { %v1066_v31 = vpop.f32.mrb[2].mxu0  ;;  %v327_v35 = vadd.f32 %v931_v29, %v326_v30 }
 0x121   : > { %v338_v33 = vadd.f32 %v1066_v31, %v931_v29  ;;  %v329_v34 = vpop.f32.mrb[3].mxu0 }
 0x122   : > { %v330_v36 = vadd.f32 %v931_v29, %v329_v34 }
 0x123   : > { %v342_v37 = vpack.c.bf16 %v338_v33, %v335_v32 }
 0x124   : > { %v341_v38 = vpack.c.bf16 %v330_v36, %v327_v35  ;;  %v967_v36 = vld [vmem:[%s1397_s3 + $0x4] ss:$0 sm:$0xff] }
 0x125   : > { %v344_v41 = vmax.bf16 %v1252_v39, %v342_v37 }
 0x126   : > { %v343_v40 = vmax.bf16 %v1252_v39, %v341_v38 }
 0x128   : > { %1083 = vmatprep.mubr.bf16.mxu1 %v343_v40 }
 0x129   : > { %1084 = vmatmul.mubr.bf16.vlgmr.msra.gmra.mrb[0].mxu1 %v344_v41 }
 0x12a   : > { %1108 = vmatpush3.bf16.msra.mxu1 %v1193_v44 }
 0x12b   : > { %1109 = vmatprep.subr.bf16.mxu1 %v1194_v45 }
 0x12e   : > { %1110 = vmatpush3.bf16.msra.mxu1 %v1194_v45 }
 0x12f   : > { %1111 = vmatprep.subr.bf16.mxu1 %v1195_v46 }
 0x132   : > { %1112 = vmatpush3.bf16.msra.mxu1 %v1195_v46 }
 0x133   : > { %1113 = vmatprep.subr.bf16.mxu1 %v1196_v47 }
 0x136   : > { %1114 = vmatpush3.bf16.msra.mxu1 %v1196_v47 }
 0x137   : > { %1115 = vmatprep.subr.bf16.mxu1 %v1197_v48 }
 0x13a   : > { %1116 = vmatpush3.bf16.msra.mxu1 %v1197_v48 }
 0x13b   : > { %1117 = vmatprep.subr.bf16.mxu1 %v1198_v49 }
 0x13e   : > { %1118 = vmatpush3.bf16.msra.mxu1 %v1198_v49 }
 0x13f   : > { %1119 = vmatprep.subr.bf16.mxu1 %v1199_v63 }
 0x142   : > { %1120 = vmatpush3.bf16.msra.mxu1 %v1199_v63 }
 0x143   : > { %1121 = vmatprep.subr.bf16.mxu1 %v1200_v0 }
 0x146   : > { %1122 = vmatpush3.bf16.msra.mxu1 %v1200_v0 }
 0x1fc   : > { %v1085_v50 = vpop.f32.mrb[0].mxu1 }
 0x1fd   : > { %v448_v52 = vpop.f32.mrb[1].mxu1  ;;  %v457_v54 = vadd.f32 %v1085_v50, %v940_v51 }
 0x1fe   : > { %v1086_v53 = vpop.f32.mrb[2].mxu1  ;;  %v449_v57 = vadd.f32 %v940_v51, %v448_v52 }
 0x1ff   : > { %v460_v55 = vadd.f32 %v1086_v53, %v940_v51  ;;  %v451_v56 = vpop.f32.mrb[3].mxu1 }
 0x200   : > { %v452_v58 = vadd.f32 %v940_v51, %v451_v56 }
 0x201   : > { %v464_v59 = vpack.c.bf16 %v460_v55, %v457_v54 }
 0x202   : > { %v463_v60 = vpack.c.bf16 %v452_v58, %v449_v57 }
 0x203   : > { %v466_v62 = vmax.bf16 %v1252_v39, %v464_v59 }
 0x204   : > { %v465_v61 = vmax.bf16 %v1252_v39, %v463_v60 }
 0x206   : > { %1103 = vmatprep.mubr.bf16.mxu0 %v465_v61 }
 0x207   : > { %1104 = vmatmul.mubr.bf16.vlgmr.msra.gmra.mrb[4].mxu0 %v466_v62 }
 0x208   : > { %1128 = vmatpush3.bf16.msra.mxu0 %v1201_v1 }
 0x209   : > { %1129 = vmatprep.subr.bf16.mxu0 %v1202_v2 }
 0x20c   : > { %1130 = vmatpush3.bf16.msra.mxu0 %v1202_v2 }
 0x20d   : > { %1131 = vmatprep.subr.bf16.mxu0 %v1203_v3 }
 0x210   : > { %1132 = vmatpush3.bf16.msra.mxu0 %v1203_v3 }
 0x211   : > { %1133 = vmatprep.subr.bf16.mxu0 %v1204_v4 }
 0x214   : > { %1134 = vmatpush3.bf16.msra.mxu0 %v1204_v4 }
 0x215   : > { %1135 = vmatprep.subr.bf16.mxu0 %v1205_v5 }
 0x218   : > { %1136 = vmatpush3.bf16.msra.mxu0 %v1205_v5 }
 0x219   : > { %1137 = vmatprep.subr.bf16.mxu0 %v1206_v6 }
 0x21c   : > { %1138 = vmatpush3.bf16.msra.mxu0 %v1206_v6 }
 0x21d   : > { %1139 = vmatprep.subr.bf16.mxu0 %v1207_v20 }
 0x220   : > { %1140 = vmatpush3.bf16.msra.mxu0 %v1207_v20 }
 0x221   : > { %1141 = vmatprep.subr.bf16.mxu0 %v1208_v21 }
 0x224   : > { %1142 = vmatpush3.bf16.msra.mxu0 %v1208_v21 }
 0x2da   : > { %v1105_v7 = vpop.f32.mrb[4].mxu0 }
 0x2db   : > { %v571_v9 = vpop.f32.mrb[5].mxu0  ;;  %v580_v11 = vadd.f32 %v1105_v7, %v949_v8 }
 0x2dc   : > { %v1106_v10 = vpop.f32.mrb[6].mxu0  ;;  %v572_v14 = vadd.f32 %v949_v8, %v571_v9 }
 0x2dd   : > { %v583_v12 = vadd.f32 %v1106_v10, %v949_v8  ;;  %v574_v13 = vpop.f32.mrb[7].mxu0 }
 0x2de   : > { %v575_v15 = vadd.f32 %v949_v8, %v574_v13 }
 0x2df   : > { %v587_v16 = vpack.c.bf16 %v583_v12, %v580_v11 }
 0x2e0   : > { %v586_v17 = vpack.c.bf16 %v575_v15, %v572_v14 }
 0x2e1   : > { %v589_v19 = vmax.bf16 %v1252_v39, %v587_v16 }
 0x2e2   : > { %v588_v18 = vmax.bf16 %v1252_v39, %v586_v17 }
 0x2e4   : > { %1123 = vmatprep.mubr.bf16.mxu1 %v588_v18 }
 0x2e5   : > { %1124 = vmatmul.mubr.bf16.vlgmr.msra.gmra.mrb[4].mxu1 %v589_v19 }
 0x3b8   : > { %v1125_v22 = vpop.f32.mrb[4].mxu1 }
 0x3b9   : > { %v694_v24 = vpop.f32.mrb[5].mxu1  ;;  %v703_v26 = vadd.f32 %v1125_v22, %v958_v23 }
 0x3ba   : > { %v1126_v25 = vpop.f32.mrb[6].mxu1  ;;  %v695_v29 = vadd.f32 %v958_v23, %v694_v24 }
 0x3bb   : > { %v706_v27 = vadd.f32 %v1126_v25, %v958_v23  ;;  %v697_v28 = vpop.f32.mrb[7].mxu1 }
 0x3bc   : > { %v698_v30 = vadd.f32 %v958_v23, %v697_v28 }
 0x3bd   : > { %v710_v31 = vpack.c.bf16 %v706_v27, %v703_v26 }
 0x3be   : > { %v709_v32 = vpack.c.bf16 %v698_v30, %v695_v29 }
 0x3bf   : > { %v712_v34 = vmax.bf16 %v1252_v39, %v710_v31 }
 0x3c0   : > { %v711_v33 = vmax.bf16 %v1252_v39, %v709_v32 }
 0x3c2   : > { %1143 = vmatprep.mubr.bf16.mxu0 %v711_v33 }
 0x3c3   : > { %1144 = vmatmul.mubr.bf16.vlgmr.msra.gmra.mrb[8].mxu0 %v712_v34 }
 0x496   : > { %v1145_v35 = vpop.f32.mrb[8].mxu0 }
 0x497   : > { %v817_v37 = vpop.f32.mrb[9].mxu0  ;;  %v826_v40 = vadd.f32 %v1145_v35, %v967_v36 }
 0x498   : > { %v1146_v38 = vpop.f32.mrb[10].mxu0  ;;  %v818_v43 = vadd.f32 %v967_v36, %v817_v37 }
 0x499   : > { %v829_v41 = vadd.f32 %v1146_v38, %v967_v36  ;;  %v820_v42 = vpop.f32.mrb[11].mxu0 }
 0x49a   : > { %v821_v44 = vadd.f32 %v967_v36, %v820_v42 }
 0x49b   : > { %v994_v45 = vpack.c.bf16 %v829_v41, %v826_v40 }
 0x49c   : > { %v989_v39 = vpack.c.bf16 %v821_v44, %v818_v43 }
 0x49d   : > { %996 = vst [vmem:[%s214_s19 + $0x8] sm:$0xff] %v994_v45  }
 0x49e   : > { %990 = vst [vmem:[%s214_s19] sm:$0xff] %v989_v39  }
 0x49f PF: > { %s15_s15 = sadd.s32 1, %s1247_s15  }
 0x4a0   : > { %p12_p3 = scmp.ge.s32.totalorder %s15_s15, 4  }
 0x4a2   :  { %14 = sbr.rel (!%p12_p3) target bundleno = 1 (0x1), region = 74 }
 0x4a9   :  { %874 = vsyncpa [#allocation3], 1 }
 0x4aa   :  { %876 = vsyncpa [#allocation3 + $0x1], 1 }

</bundles_post_ra>
